<compile_context>
chip_gen: v7x
topology: tpu7x:2x2x1
jax: 0.10.0
libtpu: 0.0.40
codegen_flags: <defaults>
</compile_context>

<pallas_src>
import functools

import jax
import jax.numpy as jnp
from jax.experimental import pallas as pl
from jax.experimental.pallas import tpu as pltpu


def _round_up(x, m):
    return ((x + m - 1) // m) * m


def latent_encoder_kernel(
    x_ref,
    w1_ref, b1_ref, w2_ref, b2_ref, w3_ref, b3_ref,
    fw1_ref, fb1_ref, fw2_ref, fb2_ref,
    out_ref,
    acc_ref,
    *, nb, traj_len, n_pad, h_size, compute_dtype,
):
    j = pl.program_id(1)

    @pl.when(j == 0)
    def _init():
        acc_ref[...] = jnp.zeros_like(acc_ref)

    w1 = w1_ref[...]            # (C, 128)   compute dtype
    b1 = b1_ref[...]            # (1, 128)   f32
    w2 = w2_ref[...]            # (128, 128) compute dtype
    b2 = b2_ref[...]            # (1, 128)   f32

    # ---- encoder layers 1-2 per batch row of this (nb, C, tl) tile ----
    pooled = []
    for b in range(nb):                                    # nb is small & static
        xb = x_ref[b]                                      # (C, tl)
        # lhs-transposed matmul: h1[s, c] = sum_f xb[f, s] * w1[f, c]
        h1 = jax.lax.dot_general(
            xb, w1, dimension_numbers=(((0,), (0,)), ((), ())),
            preferred_element_type=jnp.float32)            # (tl, 128)
        h1 = jnp.maximum(h1 + b1, 0.0)
        h2 = jnp.dot(h1.astype(compute_dtype), w2,
                     preferred_element_type=jnp.float32)
        h2 = jnp.maximum(h2 + b2, 0.0)                     # (tl, 128)
        # pooled sum over trajectory steps: cheap sublane reduce, stays f32.
        pooled.append(jnp.sum(h2, axis=0, keepdims=True))  # (1, 128)
    acc_ref[...] += jnp.concatenate(pooled, axis=0)        # (nb, 128)

    # ---- last step tile: pad correction, mean, W3, fused mu/sigma heads ----
    @pl.when(j == pl.num_programs(1) - 1)
    def _finalize():
        acc = acc_ref[...]
        if n_pad:   # static: zero-padded step columns all contribute h2_pad
            h1p = jnp.maximum(b1, 0.0)                      # (1, 128)
            h2p = jnp.maximum(
                jnp.dot(h1p.astype(compute_dtype), w2,
                        preferred_element_type=jnp.float32) + b2, 0.0)
            acc = acc - float(n_pad) * h2p
        r_mean = acc * (1.0 / traj_len)                     # (nb, 128)
        # encoder layer 3 folded through the mean (linear, no ReLU after it)
        r = jnp.dot(r_mean.astype(compute_dtype), w3_ref[...],
                    preferred_element_type=jnp.float32) + b3_ref[...]   # (nb, h)
        hm = jnp.dot(r.astype(compute_dtype), fw1_ref[...],
                     preferred_element_type=jnp.float32) + fb1_ref[...]  # (nb, 256)
        hm = jnp.maximum(hm, 0.0)
        out = jnp.dot(hm.astype(compute_dtype), fw2_ref[...],
                      preferred_element_type=jnp.float32) + fb2_ref[...]  # (nb, P)
        col = jax.lax.broadcasted_iota(jnp.int32, out.shape, 1)
        is_sigma = (col >= h_size) & (col < 2 * h_size)
        out_ref[...] = jnp.where(is_sigma, 0.1 + 0.9 * jax.nn.sigmoid(out), out)


def init_linear(key, fan_in, fan_out):
    """PyTorch-style uniform(-1/sqrt(fan_in), 1/sqrt(fan_in)) init; W stored (in, out)."""
    kw, kb = jax.random.split(key)
    bound = 1.0 / jnp.sqrt(float(fan_in))
    w = jax.random.uniform(kw, (fan_in, fan_out), jnp.float32, -bound, bound)
    b = jax.random.uniform(kb, (1, fan_out), jnp.float32, -bound, bound)
    return w, b


def make_params(key, x_size, h_size):
    ks = jax.random.split(key, 7)
    w1, b1 = init_linear(ks[0], x_size + 1, 128)
    w2, b2 = init_linear(ks[1], 128, 128)
    w3, b3 = init_linear(ks[2], 128, h_size)
    mw1, mb1 = init_linear(ks[3], h_size, 128)
    mw2, mb2 = init_linear(ks[4], 128, h_size)
    sw1, sb1 = init_linear(ks[5], h_size, 128)
    sw2, sb2 = init_linear(ks[6], 128, h_size)
    return (w1, b1, w2, b2, w3, b3, mw1, mb1, mw2, mb2, sw1, sb1, sw2, sb2)


@functools.partial(
    jax.jit,
    static_argnames=("x_size", "h_size", "compute_dtype", "block_b", "block_l"))
def latent_encoder_forward(times, trajs, params, *, x_size, h_size,
                           compute_dtype=jnp.bfloat16, block_b=8, block_l=1024):
    """times: (L,), trajs: (B, L, x_size) -> (mu, sigma), each (B, h_size) f32."""
    (w1, b1, w2, b2, w3, b3, mw1, mb1, mw2, mb2, sw1, sb1, sw2, sb2) = params
    B, L, _ = trajs.shape
    cdt = jnp.dtype(compute_dtype)

    # Tile sizes: batch tile multiple of 8 (output sublane rule); step tile is
    # a multiple of 128 lanes, or the (8-rounded) full length if it fits in one
    # tile (keeps the small exact-check case free of step padding).
    nb = _round_up(max(block_b, 1), 8)
    tl_cap = _round_up(max(block_l, 128), 128)
    tl = _round_up(L, 8) if _round_up(L, 8) <= tl_cap else tl_cap
    Lp = _round_up(L, tl)
    Bp = _round_up(B, nb)
    n_pad = Lp - L
    C = _round_up(x_size + 1, 8)

    # Channel-major (Bp, C, Lp) input: channel 0 = time, 1..x = traj dims,
    # remaining channels zero.  Feature dim pads to 8 sublanes (not 128 lanes),
    # so the streamed tile DMA is lane-dense; stored in the compute dtype.
    t_b = jnp.broadcast_to(times.reshape(1, 1, L).astype(jnp.float32), (B, 1, L))
    tr_t = jnp.transpose(trajs.astype(jnp.float32), (0, 2, 1))        # (B, x, L)
    x_in = jnp.concatenate([t_b, tr_t], axis=1)                        # (B, x+1, L)
    x_in = jnp.pad(x_in, ((0, Bp - B), (0, C - (x_size + 1)), (0, Lp - L)))
    x_in = x_in.astype(cdt)

    # Zero-padded layer-1 weight rows match the padded input channels.
    w1p = jnp.zeros((C, 128), jnp.float32).at[: x_size + 1, :].set(w1)

    # Fused mu/sigma heads: shared (h, 256) first layer, block-diagonal
    # (256, P) second layer emitting a lane-dense [mu | sigma | pad] slab.
    P = _round_up(2 * h_size, 128)
    fw1 = jnp.concatenate([mw1, sw1], axis=1)                 # (h, 256)
    fb1 = jnp.concatenate([mb1, sb1], axis=1)                 # (1, 256)
    fw2 = jnp.zeros((256, P), jnp.float32)
    fw2 = fw2.at[:128, :h_size].set(mw2).at[128:, h_size:2 * h_size].set(sw2)
    fb2 = jnp.zeros((1, P), jnp.float32)
    fb2 = fb2.at[:, :h_size].set(mb2).at[:, h_size:2 * h_size].set(sb2)

    w1c, w2c, w3c, fw1c, fw2c = (w.astype(cdt) for w in (w1p, w2, w3, fw1, fw2))
    b1c, b2c, b3c, fb1c, fb2c = (b.astype(jnp.float32) for b in (b1, b2, b3, fb1, fb2))

    grid = (Bp // nb, Lp // tl)
    # NOTE: on v7x both TensorCores are used only when Bp // nb >= 2; for very
    # small batches the step axis could instead be split across cores with
    # per-core partial accumulators.

    def full_spec(arr):
        return pl.BlockSpec(arr.shape, lambda i, j: (0,) * arr.ndim)

    kernel = functools.partial(
        latent_encoder_kernel, nb=nb, traj_len=L, n_pad=n_pad,
        h_size=h_size, compute_dtype=cdt)

    weights = [w1c, b1c, w2c, b2c, w3c, b3c, fw1c, fb1c, fw2c, fb2c]
    flops = (2 * Bp * Lp * (C * 128 + 128 * 128)
             + 2 * Bp * (128 * h_size + h_size * 256 + 256 * P))
    bytes_accessed = (x_in.size * x_in.dtype.itemsize
                      + sum(w.size * w.dtype.itemsize for w in weights)
                      + Bp * P * 4)

    out = pl.pallas_call(
        kernel,
        out_shape=jax.ShapeDtypeStruct((Bp, P), jnp.float32),
        grid_spec=pltpu.PrefetchScalarGridSpec(
            num_scalar_prefetch=0,
            grid=grid,
            in_specs=[
                pl.BlockSpec((nb, C, tl), lambda i, j: (i, 0, j)),
                full_spec(w1c), full_spec(b1c),
                full_spec(w2c), full_spec(b2c),
                full_spec(w3c), full_spec(b3c),
                full_spec(fw1c), full_spec(fb1c),
                full_spec(fw2c), full_spec(fb2c),
            ],
            out_specs=pl.BlockSpec((nb, P), lambda i, j: (i, 0)),
            scratch_shapes=[pltpu.VMEM((nb, 128), jnp.float32)],
        ),
        compiler_params=pltpu.CompilerParams(
            dimension_semantics=("parallel", "arbitrary"),
            vmem_limit_bytes=32 * 1024 * 1024),
        cost_estimate=pl.CostEstimate(
            flops=flops, transcendentals=Bp * P, bytes_accessed=bytes_accessed),
    )(x_in, *weights)

    mu = out[:B, :h_size]
    sigma = out[:B, h_size:2 * h_size]
    return mu, sigma


def reference_forward(times, trajs, params, x_size, h_size):
    """Pure-JAX reference mirroring the PyTorch module."""
    (w1, b1, w2, b2, w3, b3, mw1, mb1, mw2, mb2, sw1, sb1, sw2, sb2) = params
    B, L, _ = trajs.shape
    times_flat = jnp.tile(times.reshape(1, L, 1), (B, 1, 1)).reshape(B * L, 1)
    trajs_flat = trajs.reshape(B * L, x_size)
    x = jnp.concatenate([times_flat, trajs_flat], axis=1)
    h = jnp.maximum(x @ w1 + b1, 0.0)
    h = jnp.maximum(h @ w2 + b2, 0.0)
    r = (h @ w3 + b3).reshape(B, L, h_size).mean(axis=1)
    mu = jnp.maximum(r @ mw1 + mb1, 0.0) @ mw2 + mb2
    s = jnp.maximum(r @ sw1 + sb1, 0.0) @ sw2 + sb2
    sigma = 0.1 + 0.9 * jax.nn.sigmoid(s)
    return mu, sigma


if __name__ == "__main__":
    B, L = 2, 8
    x_size, h_size = 4, 32

    key = jax.random.PRNGKey(0)
    k_times, k_trajs, k_params = jax.random.split(key, 3)

    times = jax.random.uniform(k_times, (L,), jnp.float32)
    trajs = jax.random.normal(k_trajs, (B, L, x_size), jnp.float32)
    params = make_params(k_params, x_size, h_size)

    mu_ref, sigma_ref = reference_forward(times, trajs, params, x_size, h_size)

    # f32 path: tight check against the pure-JAX reference (single step tile).
    mu32, sg32 = latent_encoder_forward(
        times, trajs, params, x_size=x_size, h_size=h_size,
        compute_dtype=jnp.float32)
    jax.block_until_ready((mu32, sg32))
    assert mu32.shape == (B, h_size) and sg32.shape == (B, h_size)
    assert jnp.allclose(mu32, mu_ref, atol=1e-5, rtol=1e-5)
    assert jnp.allclose(sg32, sigma_ref, atol=1e-5, rtol=1e-5)

    # bf16-MXU path (f32 accumulation): looser tolerance.
    mu16, sg16 = latent_encoder_forward(
        times, trajs, params, x_size=x_size, h_size=h_size,
        compute_dtype=jnp.bfloat16)
    jax.block_until_ready((mu16, sg16))
    assert jnp.allclose(mu16, mu_ref, atol=5e-2, rtol=5e-2)
    assert jnp.allclose(sg16, sigma_ref, atol=2e-2, rtol=2e-2)

    # Multi-step-tile + ragged-padding path (accumulation across grid steps
    # and the static pad-correction), f32 for a tight check.
    B2, L2 = 4, 300
    k_t2, k_x2 = jax.random.split(jax.random.PRNGKey(1))
    times2 = jax.random.uniform(k_t2, (L2,), jnp.float32)
    trajs2 = jax.random.normal(k_x2, (B2, L2, x_size), jnp.float32)
    mu_ref2, sg_ref2 = reference_forward(times2, trajs2, params, x_size, h_size)
    mu2, sg2 = latent_encoder_forward(
        times2, trajs2, params, x_size=x_size, h_size=h_size,
        compute_dtype=jnp.float32, block_l=128)
    jax.block_until_ready((mu2, sg2))
    assert jnp.allclose(mu2, mu_ref2, atol=1e-4, rtol=1e-4)
    assert jnp.allclose(sg2, sg_ref2, atol=1e-4, rtol=1e-4)

    print("KERNEL_OK")
</pallas_src>

<mosaic_0001>
module attributes {stable_mosaic.version = 11 : i64} {
  func.func @latent_encoder_kernel(%arg0: i32, %arg1: i32, %arg2: memref<8x8x8xf32, #tpu.memory_space<vmem>>, %arg3: memref<8x128xf32, #tpu.memory_space<vmem>>, %arg4: memref<1x128xf32, #tpu.memory_space<vmem>>, %arg5: memref<128x128xf32, #tpu.memory_space<vmem>>, %arg6: memref<1x128xf32, #tpu.memory_space<vmem>>, %arg7: memref<128x32xf32, #tpu.memory_space<vmem>>, %arg8: memref<1x32xf32, #tpu.memory_space<vmem>>, %arg9: memref<32x256xf32, #tpu.memory_space<vmem>>, %arg10: memref<1x256xf32, #tpu.memory_space<vmem>>, %arg11: memref<256x128xf32, #tpu.memory_space<vmem>>, %arg12: memref<1x128xf32, #tpu.memory_space<vmem>>, %arg13: memref<8x128xf32, #tpu.memory_space<vmem>>, %arg14: memref<8x128xf32, #tpu.memory_space<vmem>>) attributes {dimension_semantics = [#tpu.dimension_semantics<parallel>, #tpu.dimension_semantics<arbitrary>], iteration_bounds = array<i64: 1, 1>, scalar_prefetch = 0 : i64, scratch_operands = 1 : i64, tpu.core_type = #tpu.core_type<tc>, window_params = [{transform_indices = @transform_0, window_bounds = array<i64: 8, 8, 8>}, {pipeline_mode = #tpu.pipeline_mode<synchronous>, transform_indices = @transform_1, window_bounds = array<i64: 8, 128>}, {pipeline_mode = #tpu.pipeline_mode<synchronous>, transform_indices = @transform_2, window_bounds = array<i64: 1, 128>}, {pipeline_mode = #tpu.pipeline_mode<synchronous>, transform_indices = @transform_3, window_bounds = array<i64: 128, 128>}, {pipeline_mode = #tpu.pipeline_mode<synchronous>, transform_indices = @transform_4, window_bounds = array<i64: 1, 128>}, {pipeline_mode = #tpu.pipeline_mode<synchronous>, transform_indices = @transform_5, window_bounds = array<i64: 128, 32>}, {pipeline_mode = #tpu.pipeline_mode<synchronous>, transform_indices = @transform_6, window_bounds = array<i64: 1, 32>}, {pipeline_mode = #tpu.pipeline_mode<synchronous>, transform_indices = @transform_7, window_bounds = array<i64: 32, 256>}, {pipeline_mode = #tpu.pipeline_mode<synchronous>, transform_indices = @transform_8, window_bounds = array<i64: 1, 256>}, {pipeline_mode = #tpu.pipeline_mode<synchronous>, transform_indices = @transform_9, window_bounds = array<i64: 256, 128>}, {pipeline_mode = #tpu.pipeline_mode<synchronous>, transform_indices = @transform_10, window_bounds = array<i64: 1, 128>}, {transform_indices = @transform_11, window_bounds = array<i64: 8, 128>}]} {
    %c0_i32 = arith.constant 0 : i32
    %0 = arith.cmpi eq, %arg1, %c0_i32 : i32
    %1 = arith.extui %0 : i1 to i32
    %c0_i32_0 = arith.constant 0 : i32
    %2 = arith.cmpi ne, %1, %c0_i32_0 : i32
    scf.if %2 {
      %cst_70 = arith.constant 0.000000e+00 : f32
      %126 = vector.broadcast %cst_70 : f32 to vector<8x128xf32>
      %c0_71 = arith.constant 0 : index
      %c0_72 = arith.constant 0 : index
      %127 = vector.load %arg14[%c0_71, %c0_72] : memref<8x128xf32, #tpu.memory_space<vmem>>, vector<8x128xf32>
      tpu.vector_store %arg14[%c0_71, %c0_72], %126 {strides = array<i32>} : memref<8x128xf32, #tpu.memory_space<vmem>>, vector<8x128xf32>,
    } else {
    }
    %c0 = arith.constant 0 : index
    %c0_1 = arith.constant 0 : index
    %3 = vector.load %arg3[%c0, %c0_1] : memref<8x128xf32, #tpu.memory_space<vmem>>, vector<8x128xf32>
    %c0_2 = arith.constant 0 : index
    %c0_3 = arith.constant 0 : index
    %4 = vector.load %arg4[%c0_2, %c0_3] : memref<1x128xf32, #tpu.memory_space<vmem>>, vector<1x128xf32>
    %c0_4 = arith.constant 0 : index
    %c0_5 = arith.constant 0 : index
    %5 = vector.load %arg5[%c0_4, %c0_5] : memref<128x128xf32, #tpu.memory_space<vmem>>, vector<128x128xf32>
    %c0_6 = arith.constant 0 : index
    %c0_7 = arith.constant 0 : index
    %6 = vector.load %arg6[%c0_6, %c0_7] : memref<1x128xf32, #tpu.memory_space<vmem>>, vector<1x128xf32>
    %c0_8 = arith.constant 0 : index
    %c0_9 = arith.constant 0 : index
    %c0_10 = arith.constant 0 : index
    %7 = vector.load %arg2[%c0_8, %c0_9, %c0_10] : memref<8x8x8xf32, #tpu.memory_space<vmem>>, vector<1x8x8xf32>
    %8 = vector.shape_cast %7 : vector<1x8x8xf32> to vector<8x8xf32>
    %cst = arith.constant dense<0.000000e+00> : vector<8x128xf32>
    %9 = tpu.matmul %8, %3, %cst {dimension_numbers = #tpu.dot_dimension_numbers<[0], [0], [1], [1], [0, 1, 1, 1], [], []>} : vector<8x8xf32>, vector<8x128xf32>, vector<8x128xf32> -> vector<8x128xf32>
    %10 = vector.broadcast %4 : vector<1x128xf32> to vector<8x128xf32>
    %11 = arith.addf %9, %10 : vector<8x128xf32>
    %cst_11 = arith.constant 0.000000e+00 : f32
    %12 = vector.broadcast %cst_11 : f32 to vector<8x128xf32>
    %13 = arith.maximumf %11, %12 : vector<8x128xf32>
    %cst_12 = arith.constant dense<0.000000e+00> : vector<8x128xf32>
    %14 = tpu.matmul %13, %5, %cst_12 {dimension_numbers = #tpu.dot_dimension_numbers<[1], [0], [0], [1], [0, 0, 1, 1], [], []>} : vector<8x128xf32>, vector<128x128xf32>, vector<8x128xf32> -> vector<8x128xf32>
    %15 = vector.broadcast %6 : vector<1x128xf32> to vector<8x128xf32>
    %16 = arith.addf %14, %15 : vector<8x128xf32>
    %cst_13 = arith.constant 0.000000e+00 : f32
    %17 = vector.broadcast %cst_13 : f32 to vector<8x128xf32>
    %18 = arith.maximumf %16, %17 : vector<8x128xf32>
    %cst_14 = arith.constant dense<0.000000e+00> : vector<128xf32>
    %19 = vector.multi_reduction <add>, %18, %cst_14 [0] : vector<8x128xf32> to vector<128xf32>
    %20 = vector.shape_cast %19 : vector<128xf32> to vector<1x128xf32>
    %c1 = arith.constant 1 : index
    %c0_15 = arith.constant 0 : index
    %c0_16 = arith.constant 0 : index
    %21 = vector.load %arg2[%c1, %c0_15, %c0_16] : memref<8x8x8xf32, #tpu.memory_space<vmem>>, vector<1x8x8xf32>
    %22 = vector.shape_cast %21 : vector<1x8x8xf32> to vector<8x8xf32>
    %cst_17 = arith.constant dense<0.000000e+00> : vector<8x128xf32>
    %23 = tpu.matmul %22, %3, %cst_17 {dimension_numbers = #tpu.dot_dimension_numbers<[0], [0], [1], [1], [0, 1, 1, 1], [], []>} : vector<8x8xf32>, vector<8x128xf32>, vector<8x128xf32> -> vector<8x128xf32>
    %24 = vector.broadcast %4 : vector<1x128xf32> to vector<8x128xf32>
    %25 = arith.addf %23, %24 : vector<8x128xf32>
    %cst_18 = arith.constant 0.000000e+00 : f32
    %26 = vector.broadcast %cst_18 : f32 to vector<8x128xf32>
    %27 = arith.maximumf %25, %26 : vector<8x128xf32>
    %cst_19 = arith.constant dense<0.000000e+00> : vector<8x128xf32>
    %28 = tpu.matmul %27, %5, %cst_19 {dimension_numbers = #tpu.dot_dimension_numbers<[1], [0], [0], [1], [0, 0, 1, 1], [], []>} : vector<8x128xf32>, vector<128x128xf32>, vector<8x128xf32> -> vector<8x128xf32>
    %29 = vector.broadcast %6 : vector<1x128xf32> to vector<8x128xf32>
    %30 = arith.addf %28, %29 : vector<8x128xf32>
    %cst_20 = arith.constant 0.000000e+00 : f32
    %31 = vector.broadcast %cst_20 : f32 to vector<8x128xf32>
    %32 = arith.maximumf %30, %31 : vector<8x128xf32>
    %cst_21 = arith.constant dense<0.000000e+00> : vector<128xf32>
    %33 = vector.multi_reduction <add>, %32, %cst_21 [0] : vector<8x128xf32> to vector<128xf32>
    %34 = vector.shape_cast %33 : vector<128xf32> to vector<1x128xf32>
    %c2 = arith.constant 2 : index
    %c0_22 = arith.constant 0 : index
    %c0_23 = arith.constant 0 : index
    %35 = vector.load %arg2[%c2, %c0_22, %c0_23] : memref<8x8x8xf32, #tpu.memory_space<vmem>>, vector<1x8x8xf32>
    %36 = vector.shape_cast %35 : vector<1x8x8xf32> to vector<8x8xf32>
    %cst_24 = arith.constant dense<0.000000e+00> : vector<8x128xf32>
    %37 = tpu.matmul %36, %3, %cst_24 {dimension_numbers = #tpu.dot_dimension_numbers<[0], [0], [1], [1], [0, 1, 1, 1], [], []>} : vector<8x8xf32>, vector<8x128xf32>, vector<8x128xf32> -> vector<8x128xf32>
    %38 = vector.broadcast %4 : vector<1x128xf32> to vector<8x128xf32>
    %39 = arith.addf %37, %38 : vector<8x128xf32>
    %cst_25 = arith.constant 0.000000e+00 : f32
    %40 = vector.broadcast %cst_25 : f32 to vector<8x128xf32>
    %41 = arith.maximumf %39, %40 : vector<8x128xf32>
    %cst_26 = arith.constant dense<0.000000e+00> : vector<8x128xf32>
    %42 = tpu.matmul %41, %5, %cst_26 {dimension_numbers = #tpu.dot_dimension_numbers<[1], [0], [0], [1], [0, 0, 1, 1], [], []>} : vector<8x128xf32>, vector<128x128xf32>, vector<8x128xf32> -> vector<8x128xf32>
    %43 = vector.broadcast %6 : vector<1x128xf32> to vector<8x128xf32>
    %44 = arith.addf %42, %43 : vector<8x128xf32>
    %cst_27 = arith.constant 0.000000e+00 : f32
    %45 = vector.broadcast %cst_27 : f32 to vector<8x128xf32>
    %46 = arith.maximumf %44, %45 : vector<8x128xf32>
    %cst_28 = arith.constant dense<0.000000e+00> : vector<128xf32>
    %47 = vector.multi_reduction <add>, %46, %cst_28 [0] : vector<8x128xf32> to vector<128xf32>
    %48 = vector.shape_cast %47 : vector<128xf32> to vector<1x128xf32>
    %c3 = arith.constant 3 : index
    %c0_29 = arith.constant 0 : index
    %c0_30 = arith.constant 0 : index
    %49 = vector.load %arg2[%c3, %c0_29, %c0_30] : memref<8x8x8xf32, #tpu.memory_space<vmem>>, vector<1x8x8xf32>
    %50 = vector.shape_cast %49 : vector<1x8x8xf32> to vector<8x8xf32>
    %cst_31 = arith.constant dense<0.000000e+00> : vector<8x128xf32>
    %51 = tpu.matmul %50, %3, %cst_31 {dimension_numbers = #tpu.dot_dimension_numbers<[0], [0], [1], [1], [0, 1, 1, 1], [], []>} : vector<8x8xf32>, vector<8x128xf32>, vector<8x128xf32> -> vector<8x128xf32>
    %52 = vector.broadcast %4 : vector<1x128xf32> to vector<8x128xf32>
    %53 = arith.addf %51, %52 : vector<8x128xf32>
    %cst_32 = arith.constant 0.000000e+00 : f32
    %54 = vector.broadcast %cst_32 : f32 to vector<8x128xf32>
    %55 = arith.maximumf %53, %54 : vector<8x128xf32>
    %cst_33 = arith.constant dense<0.000000e+00> : vector<8x128xf32>
    %56 = tpu.matmul %55, %5, %cst_33 {dimension_numbers = #tpu.dot_dimension_numbers<[1], [0], [0], [1], [0, 0, 1, 1], [], []>} : vector<8x128xf32>, vector<128x128xf32>, vector<8x128xf32> -> vector<8x128xf32>
    %57 = vector.broadcast %6 : vector<1x128xf32> to vector<8x128xf32>
    %58 = arith.addf %56, %57 : vector<8x128xf32>
    %cst_34 = arith.constant 0.000000e+00 : f32
    %59 = vector.broadcast %cst_34 : f32 to vector<8x128xf32>
    %60 = arith.maximumf %58, %59 : vector<8x128xf32>
    %cst_35 = arith.constant dense<0.000000e+00> : vector<128xf32>
    %61 = vector.multi_reduction <add>, %60, %cst_35 [0] : vector<8x128xf32> to vector<128xf32>
    %62 = vector.shape_cast %61 : vector<128xf32> to vector<1x128xf32>
    %c4 = arith.constant 4 : index
    %c0_36 = arith.constant 0 : index
    %c0_37 = arith.constant 0 : index
    %63 = vector.load %arg2[%c4, %c0_36, %c0_37] : memref<8x8x8xf32, #tpu.memory_space<vmem>>, vector<1x8x8xf32>
    %64 = vector.shape_cast %63 : vector<1x8x8xf32> to vector<8x8xf32>
    %cst_38 = arith.constant dense<0.000000e+00> : vector<8x128xf32>
    %65 = tpu.matmul %64, %3, %cst_38 {dimension_numbers = #tpu.dot_dimension_numbers<[0], [0], [1], [1], [0, 1, 1, 1], [], []>} : vector<8x8xf32>, vector<8x128xf32>, vector<8x128xf32> -> vector<8x128xf32>
    %66 = vector.broadcast %4 : vector<1x128xf32> to vector<8x128xf32>
    %67 = arith.addf %65, %66 : vector<8x128xf32>
    %cst_39 = arith.constant 0.000000e+00 : f32
    %68 = vector.broadcast %cst_39 : f32 to vector<8x128xf32>
    %69 = arith.maximumf %67, %68 : vector<8x128xf32>
    %cst_40 = arith.constant dense<0.000000e+00> : vector<8x128xf32>
    %70 = tpu.matmul %69, %5, %cst_40 {dimension_numbers = #tpu.dot_dimension_numbers<[1], [0], [0], [1], [0, 0, 1, 1], [], []>} : vector<8x128xf32>, vector<128x128xf32>, vector<8x128xf32> -> vector<8x128xf32>
    %71 = vector.broadcast %6 : vector<1x128xf32> to vector<8x128xf32>
    %72 = arith.addf %70, %71 : vector<8x128xf32>
    %cst_41 = arith.constant 0.000000e+00 : f32
    %73 = vector.broadcast %cst_41 : f32 to vector<8x128xf32>
    %74 = arith.maximumf %72, %73 : vector<8x128xf32>
    %cst_42 = arith.constant dense<0.000000e+00> : vector<128xf32>
    %75 = vector.multi_reduction <add>, %74, %cst_42 [0] : vector<8x128xf32> to vector<128xf32>
    %76 = vector.shape_cast %75 : vector<128xf32> to vector<1x128xf32>
    %c5 = arith.constant 5 : index
    %c0_43 = arith.constant 0 : index
    %c0_44 = arith.constant 0 : index
    %77 = vector.load %arg2[%c5, %c0_43, %c0_44] : memref<8x8x8xf32, #tpu.memory_space<vmem>>, vector<1x8x8xf32>
    %78 = vector.shape_cast %77 : vector<1x8x8xf32> to vector<8x8xf32>
    %cst_45 = arith.constant dense<0.000000e+00> : vector<8x128xf32>
    %79 = tpu.matmul %78, %3, %cst_45 {dimension_numbers = #tpu.dot_dimension_numbers<[0], [0], [1], [1], [0, 1, 1, 1], [], []>} : vector<8x8xf32>, vector<8x128xf32>, vector<8x128xf32> -> vector<8x128xf32>
    %80 = vector.broadcast %4 : vector<1x128xf32> to vector<8x128xf32>
    %81 = arith.addf %79, %80 : vector<8x128xf32>
    %cst_46 = arith.constant 0.000000e+00 : f32
    %82 = vector.broadcast %cst_46 : f32 to vector<8x128xf32>
    %83 = arith.maximumf %81, %82 : vector<8x128xf32>
    %cst_47 = arith.constant dense<0.000000e+00> : vector<8x128xf32>
    %84 = tpu.matmul %83, %5, %cst_47 {dimension_numbers = #tpu.dot_dimension_numbers<[1], [0], [0], [1], [0, 0, 1, 1], [], []>} : vector<8x128xf32>, vector<128x128xf32>, vector<8x128xf32> -> vector<8x128xf32>
    %85 = vector.broadcast %6 : vector<1x128xf32> to vector<8x128xf32>
    %86 = arith.addf %84, %85 : vector<8x128xf32>
    %cst_48 = arith.constant 0.000000e+00 : f32
    %87 = vector.broadcast %cst_48 : f32 to vector<8x128xf32>
    %88 = arith.maximumf %86, %87 : vector<8x128xf32>
    %cst_49 = arith.constant dense<0.000000e+00> : vector<128xf32>
    %89 = vector.multi_reduction <add>, %88, %cst_49 [0] : vector<8x128xf32> to vector<128xf32>
    %90 = vector.shape_cast %89 : vector<128xf32> to vector<1x128xf32>
    %c6 = arith.constant 6 : index
    %c0_50 = arith.constant 0 : index
    %c0_51 = arith.constant 0 : index
    %91 = vector.load %arg2[%c6, %c0_50, %c0_51] : memref<8x8x8xf32, #tpu.memory_space<vmem>>, vector<1x8x8xf32>
    %92 = vector.shape_cast %91 : vector<1x8x8xf32> to vector<8x8xf32>
    %cst_52 = arith.constant dense<0.000000e+00> : vector<8x128xf32>
    %93 = tpu.matmul %92, %3, %cst_52 {dimension_numbers = #tpu.dot_dimension_numbers<[0], [0], [1], [1], [0, 1, 1, 1], [], []>} : vector<8x8xf32>, vector<8x128xf32>, vector<8x128xf32> -> vector<8x128xf32>
    %94 = vector.broadcast %4 : vector<1x128xf32> to vector<8x128xf32>
    %95 = arith.addf %93, %94 : vector<8x128xf32>
    %cst_53 = arith.constant 0.000000e+00 : f32
    %96 = vector.broadcast %cst_53 : f32 to vector<8x128xf32>
    %97 = arith.maximumf %95, %96 : vector<8x128xf32>
    %cst_54 = arith.constant dense<0.000000e+00> : vector<8x128xf32>
    %98 = tpu.matmul %97, %5, %cst_54 {dimension_numbers = #tpu.dot_dimension_numbers<[1], [0], [0], [1], [0, 0, 1, 1], [], []>} : vector<8x128xf32>, vector<128x128xf32>, vector<8x128xf32> -> vector<8x128xf32>
    %99 = vector.broadcast %6 : vector<1x128xf32> to vector<8x128xf32>
    %100 = arith.addf %98, %99 : vector<8x128xf32>
    %cst_55 = arith.constant 0.000000e+00 : f32
    %101 = vector.broadcast %cst_55 : f32 to vector<8x128xf32>
    %102 = arith.maximumf %100, %101 : vector<8x128xf32>
    %cst_56 = arith.constant dense<0.000000e+00> : vector<128xf32>
    %103 = vector.multi_reduction <add>, %102, %cst_56 [0] : vector<8x128xf32> to vector<128xf32>
    %104 = vector.shape_cast %103 : vector<128xf32> to vector<1x128xf32>
    %c7 = arith.constant 7 : index
    %c0_57 = arith.constant 0 : index
    %c0_58 = arith.constant 0 : index
    %105 = vector.load %arg2[%c7, %c0_57, %c0_58] : memref<8x8x8xf32, #tpu.memory_space<vmem>>, vector<1x8x8xf32>
    %106 = vector.shape_cast %105 : vector<1x8x8xf32> to vector<8x8xf32>
    %cst_59 = arith.constant dense<0.000000e+00> : vector<8x128xf32>
    %107 = tpu.matmul %106, %3, %cst_59 {dimension_numbers = #tpu.dot_dimension_numbers<[0], [0], [1], [1], [0, 1, 1, 1], [], []>} : vector<8x8xf32>, vector<8x128xf32>, vector<8x128xf32> -> vector<8x128xf32>
    %108 = vector.broadcast %4 : vector<1x128xf32> to vector<8x128xf32>
    %109 = arith.addf %107, %108 : vector<8x128xf32>
    %cst_60 = arith.constant 0.000000e+00 : f32
    %110 = vector.broadcast %cst_60 : f32 to vector<8x128xf32>
    %111 = arith.maximumf %109, %110 : vector<8x128xf32>
    %cst_61 = arith.constant dense<0.000000e+00> : vector<8x128xf32>
    %112 = tpu.matmul %111, %5, %cst_61 {dimension_numbers = #tpu.dot_dimension_numbers<[1], [0], [0], [1], [0, 0, 1, 1], [], []>} : vector<8x128xf32>, vector<128x128xf32>, vector<8x128xf32> -> vector<8x128xf32>
    %113 = vector.broadcast %6 : vector<1x128xf32> to vector<8x128xf32>
    %114 = arith.addf %112, %113 : vector<8x128xf32>
    %cst_62 = arith.constant 0.000000e+00 : f32
    %115 = vector.broadcast %cst_62 : f32 to vector<8x128xf32>
    %116 = arith.maximumf %114, %115 : vector<8x128xf32>
    %cst_63 = arith.constant dense<0.000000e+00> : vector<128xf32>
    %117 = vector.multi_reduction <add>, %116, %cst_63 [0] : vector<8x128xf32> to vector<128xf32>
    %118 = vector.shape_cast %117 : vector<128xf32> to vector<1x128xf32>
    %c0_64 = arith.constant 0 : index
    %c0_65 = arith.constant 0 : index
    %119 = vector.load %arg14[%c0_64, %c0_65] : memref<8x128xf32, #tpu.memory_space<vmem>>, vector<8x128xf32>
    %120 = tpu.concatenate %20, %34, %48, %62, %76, %90, %104, %118 in 0 : vector<1x128xf32>, vector<1x128xf32>, vector<1x128xf32>, vector<1x128xf32>, vector<1x128xf32>, vector<1x128xf32>, vector<1x128xf32>, vector<1x128xf32> -> vector<8x128xf32>
    %121 = arith.addf %119, %120 : vector<8x128xf32>
    %c0_66 = arith.constant 0 : index
    %c0_67 = arith.constant 0 : index
    %122 = vector.load %arg14[%c0_66, %c0_67] : memref<8x128xf32, #tpu.memory_space<vmem>>, vector<8x128xf32>
    tpu.vector_store %arg14[%c0_66, %c0_67], %121 {strides = array<i32>} : memref<8x128xf32, #tpu.memory_space<vmem>>, vector<8x128xf32>,
    %c0_i32_68 = arith.constant 0 : i32
    %123 = arith.cmpi eq, %arg1, %c0_i32_68 : i32
    %124 = arith.extui %123 : i1 to i32
    %c0_i32_69 = arith.constant 0 : i32
    %125 = arith.cmpi ne, %124, %c0_i32_69 : i32
    scf.if %125 {
      %c0_70 = arith.constant 0 : index
      %c0_71 = arith.constant 0 : index
      %126 = vector.load %arg14[%c0_70, %c0_71] : memref<8x128xf32, #tpu.memory_space<vmem>>, vector<8x128xf32>
      %cst_72 = arith.constant 1.250000e-01 : f32
      %127 = vector.broadcast %cst_72 : f32 to vector<8x128xf32>
      %128 = arith.mulf %126, %127 : vector<8x128xf32>
      %c0_73 = arith.constant 0 : index
      %c0_74 = arith.constant 0 : index
      %129 = vector.load %arg7[%c0_73, %c0_74] : memref<128x32xf32, #tpu.memory_space<vmem>>, vector<128x32xf32>
      %cst_75 = arith.constant dense<0.000000e+00> : vector<8x32xf32>
      %130 = tpu.matmul %128, %129, %cst_75 {dimension_numbers = #tpu.dot_dimension_numbers<[1], [0], [0], [1], [0, 0, 1, 1], [], []>} : vector<8x128xf32>, vector<128x32xf32>, vector<8x32xf32> -> vector<8x32xf32>
      %c0_76 = arith.constant 0 : index
      %c0_77 = arith.constant 0 : index
      %131 = vector.load %arg8[%c0_76, %c0_77] : memref<1x32xf32, #tpu.memory_space<vmem>>, vector<1x32xf32>
      %132 = vector.broadcast %131 : vector<1x32xf32> to vector<8x32xf32>
      %133 = arith.addf %130, %132 : vector<8x32xf32>
      %c0_78 = arith.constant 0 : index
      %c0_79 = arith.constant 0 : index
      %134 = vector.load %arg9[%c0_78, %c0_79] : memref<32x256xf32, #tpu.memory_space<vmem>>, vector<32x256xf32>
      %cst_80 = arith.constant dense<0.000000e+00> : vector<8x256xf32>
      %135 = tpu.matmul %133, %134, %cst_80 {dimension_numbers = #tpu.dot_dimension_numbers<[1], [0], [0], [1], [0, 0, 1, 1], [], []>} : vector<8x32xf32>, vector<32x256xf32>, vector<8x256xf32> -> vector<8x256xf32>
      %c0_81 = arith.constant 0 : index
      %c0_82 = arith.constant 0 : index
      %136 = vector.load %arg10[%c0_81, %c0_82] : memref<1x256xf32, #tpu.memory_space<vmem>>, vector<1x256xf32>
      %137 = vector.broadcast %136 : vector<1x256xf32> to vector<8x256xf32>
      %138 = arith.addf %135, %137 : vector<8x256xf32>
      %cst_83 = arith.constant 0.000000e+00 : f32
      %139 = vector.broadcast %cst_83 : f32 to vector<8x256xf32>
      %140 = arith.maximumf %138, %139 : vector<8x256xf32>
      %c0_84 = arith.constant 0 : index
      %c0_85 = arith.constant 0 : index
      %141 = vector.load %arg11[%c0_84, %c0_85] : memref<256x128xf32, #tpu.memory_space<vmem>>, vector<256x128xf32>
      %cst_86 = arith.constant dense<0.000000e+00> : vector<8x128xf32>
      %142 = tpu.matmul %140, %141, %cst_86 {dimension_numbers = #tpu.dot_dimension_numbers<[1], [0], [0], [1], [0, 0, 1, 1], [], []>} : vector<8x256xf32>, vector<256x128xf32>, vector<8x128xf32> -> vector<8x128xf32>
      %c0_87 = arith.constant 0 : index
      %c0_88 = arith.constant 0 : index
      %143 = vector.load %arg12[%c0_87, %c0_88] : memref<1x128xf32, #tpu.memory_space<vmem>>, vector<1x128xf32>
      %144 = vector.broadcast %143 : vector<1x128xf32> to vector<8x128xf32>
      %145 = arith.addf %142, %144 : vector<8x128xf32>
      %146 = tpu.iota {dimensions = array<i32: 1>} : vector<8x128xi32>
      %c32_i32 = arith.constant 32 : i32
      %147 = vector.broadcast %c32_i32 : i32 to vector<8x128xi32>
      %148 = arith.cmpi sge, %146, %147 : vector<8x128xi32>
      %c64_i32 = arith.constant 64 : i32
      %149 = vector.broadcast %c64_i32 : i32 to vector<8x128xi32>
      %150 = arith.cmpi slt, %146, %149 : vector<8x128xi32>
      %151 = arith.andi %148, %150 : vector<8x128xi1>
      %152 = arith.negf %145 : vector<8x128xf32>
      %153 = math.exp %152 : vector<8x128xf32>
      %cst_89 = arith.constant 1.000000e+00 : f32
      %154 = vector.broadcast %cst_89 : f32 to vector<8x128xf32>
      %155 = arith.addf %154, %153 : vector<8x128xf32>
      %156 = arith.divf %154, %155 : vector<8x128xf32>
      %cst_90 = arith.constant 0.899999976 : f32
      %157 = vector.broadcast %cst_90 : f32 to vector<8x128xf32>
      %158 = arith.mulf %157, %156 : vector<8x128xf32>
      %cst_91 = arith.constant 1.000000e-01 : f32
      %159 = vector.broadcast %cst_91 : f32 to vector<8x128xf32>
      %160 = arith.addf %159, %158 : vector<8x128xf32>
      %161 = arith.select %151, %160, %145 : vector<8x128xi1>, vector<8x128xf32>
      %c0_92 = arith.constant 0 : index
      %c0_93 = arith.constant 0 : index
      %162 = vector.load %arg13[%c0_92, %c0_93] : memref<8x128xf32, #tpu.memory_space<vmem>>, vector<8x128xf32>
      tpu.vector_store %arg13[%c0_92, %c0_93], %161 {strides = array<i32>} : memref<8x128xf32, #tpu.memory_space<vmem>>, vector<8x128xf32>,
    } else {
    }
    return
  }
  func.func @transform_0(%arg0: i32, %arg1: i32) -> (i32, i32, i32) {
    %c0_i32 = arith.constant 0 : i32
    %c0_i32_0 = arith.constant 0 : i32
    return %arg0, %c0_i32, %arg1 : i32, i32, i32
  }
  func.func @transform_1(%arg0: i32, %arg1: i32) -> (i32, i32) {
    %c0_i32 = arith.constant 0 : i32
    %c0_i32_0 = arith.constant 0 : i32
    %c0_i32_1 = arith.constant 0 : i32
    return %c0_i32, %c0_i32_0 : i32, i32
  }
  func.func @transform_2(%arg0: i32, %arg1: i32) -> (i32, i32) {
    %c0_i32 = arith.constant 0 : i32
    %c0_i32_0 = arith.constant 0 : i32
    %c0_i32_1 = arith.constant 0 : i32
    return %c0_i32, %c0_i32_0 : i32, i32
  }
  func.func @transform_3(%arg0: i32, %arg1: i32) -> (i32, i32) {
    %c0_i32 = arith.constant 0 : i32
    %c0_i32_0 = arith.constant 0 : i32
    %c0_i32_1 = arith.constant 0 : i32
    return %c0_i32, %c0_i32_0 : i32, i32
  }
  func.func @transform_4(%arg0: i32, %arg1: i32) -> (i32, i32) {
    %c0_i32 = arith.constant 0 : i32
    %c0_i32_0 = arith.constant 0 : i32
    %c0_i32_1 = arith.constant 0 : i32
    return %c0_i32, %c0_i32_0 : i32, i32
  }
  func.func @transform_5(%arg0: i32, %arg1: i32) -> (i32, i32) {
    %c0_i32 = arith.constant 0 : i32
    %c0_i32_0 = arith.constant 0 : i32
    %c0_i32_1 = arith.constant 0 : i32
    return %c0_i32, %c0_i32_0 : i32, i32
  }
  func.func @transform_6(%arg0: i32, %arg1: i32) -> (i32, i32) {
    %c0_i32 = arith.constant 0 : i32
    %c0_i32_0 = arith.constant 0 : i32
    %c0_i32_1 = arith.constant 0 : i32
    return %c0_i32, %c0_i32_0 : i32, i32
  }
  func.func @transform_7(%arg0: i32, %arg1: i32) -> (i32, i32) {
    %c0_i32 = arith.constant 0 : i32
    %c0_i32_0 = arith.constant 0 : i32
    %c0_i32_1 = arith.constant 0 : i32
    return %c0_i32, %c0_i32_0 : i32, i32
  }
  func.func @transform_8(%arg0: i32, %arg1: i32) -> (i32, i32) {
    %c0_i32 = arith.constant 0 : i32
    %c0_i32_0 = arith.constant 0 : i32
    %c0_i32_1 = arith.constant 0 : i32
    return %c0_i32, %c0_i32_0 : i32, i32
  }
  func.func @transform_9(%arg0: i32, %arg1: i32) -> (i32, i32) {
    %c0_i32 = arith.constant 0 : i32
    %c0_i32_0 = arith.constant 0 : i32
    %c0_i32_1 = arith.constant 0 : i32
    return %c0_i32, %c0_i32_0 : i32, i32
  }
  func.func @transform_10(%arg0: i32, %arg1: i32) -> (i32, i32) {
    %c0_i32 = arith.constant 0 : i32
    %c0_i32_0 = arith.constant 0 : i32
    %c0_i32_1 = arith.constant 0 : i32
    return %c0_i32, %c0_i32_0 : i32, i32
  }
  func.func @transform_11(%arg0: i32, %arg1: i32) -> (i32, i32) {
    %c0_i32 = arith.constant 0 : i32
    %c0_i32_0 = arith.constant 0 : i32
    return %arg0, %c0_i32 : i32, i32
  }
}

</mosaic_0001>

<bundles_post_ra>
// kernel: latent_encoder_forward.1
= control target key start
LH: loop header
LB: loop body
LE: loop exit
PB: predicated region body
PF: predicated region fallthrough
CT: control target
= control target key end

     0   :  { %v2737_v1 = vmov 0.0   ;;  %vm2738_vm0 = vmmov 0   ;;  %v2739_v5 = vmov 0.0|0.0   ;;  %vm101_vm1 = vcmask 64512   ;;  %s3300_s0 = inlined_call_operand.vmem [shape: f32[8,8,8], index: 0, kind: input, shape index: {}]   ;;  %s3301_s1 = inlined_call_operand.vmem [shape: f32[8,128], index: 1, kind: input, shape index: {}]   ;;  %s3302_s3 = inlined_call_operand.vmem [shape: f32[128,128], index: 3, kind: input, shape index: {}]   ;;  %s3303_s2 = inlined_call_operand.vmem [shape: f32[1,128], index: 2, kind: input, shape index: {}]   ;;  %s3304_s4 = inlined_call_operand.vmem [shape: f32[1,128], index: 4, kind: input, shape index: {}]   ;;  %s3305_s5 = inlined_call_operand.vmem [shape: f32[128,32], index: 5, kind: input, shape index: {}]   ;;  %s3306_s7 = inlined_call_operand.vmem [shape: f32[32,256], index: 7, kind: input, shape index: {}]   ;;  %s3307_s9 = inlined_call_operand.vmem [shape: f32[256,128], index: 9, kind: input, shape index: {}]   ;;  %s3308_s6 = inlined_call_operand.vmem [shape: f32[1,32], index: 6, kind: input, shape index: {}]   ;;  %s3309_s8 = inlined_call_operand.vmem [shape: f32[1,256], index: 8, kind: input, shape index: {}]   ;;  %s3310_s10 = inlined_call_operand.vmem [shape: f32[1,128], index: 10, kind: input, shape index: {}]   ;;  %s3311_s11 = inlined_call_operand.vmem [shape: f32[8,128], index: 11, kind: output, shape index: {}]  }
   0x1   :  { %v62_v0 = vld [vmem:[%s3300_s0] sm:$0xff]  ;;  %2119 = vmatprep.subr.mxu0 %v2737_v1  ;;  %2121 = vmatprep.mubr.msk.f32.mxu0 %vm2738_vm0, %v2737_v1  ;;  %v1897_v3 = vld [vmem:[%s3300_s0 + $0x8] sm:$0xff]  ;;  %v1899_v4 = vld [vmem:[%s3300_s0 + $0x10] sm:$0xff]  ;;  %vm1555_vm2 = vcmask 1040384   ;;  %vm1557_vm3 = vcmask 1041408   ;;  %vm1559_vm4 = vcmask 1042432  }
   0x2   :  { %v2807_v2 = vld [vmem:[%s3301_s1] sm:$0xff]  ;;  %69 = vxpose.xlu0.b32.start.end [1/1] (short) (narrow) %v62_v0, 8  ;;  %2156 = vmatprep.mubr.msk.f32.mxu1 %vm2738_vm0, %v2737_v1  ;;  %v46_v7 = vld [vmem:[%s3302_s3 + $0x8] sm:$0xff]  ;;  %v47_v8 = vld [vmem:[%s3302_s3 + $0x10] sm:$0xff]  ;;  %vm1561_vm5 = vcmask 1043456   ;;  %vm1563_vm6 = vcmask 1044480  }
   0x3   :  { %2120 = vmatpush3.msra.mxu0 %v2807_v2  ;;  %446 = vxpose.xlu1.b32.start.end [1/1] (short) (narrow) %v1899_v4, 8  ;;  %v45_v6 = vld [vmem:[%s3302_s3] sm:$0xff]  ;;  %v1901_v9 = vld [vmem:[%s3300_s0 + $0x18] sm:$0xff]  ;;  %v50_v14 = vld [vmem:[%s3302_s3 + $0x28] sm:$0xff]  ;;  %vm1565_vm7 = vcmask 1045504   ;;  %vm1567_vm8 = vcmask 1046528  }
   0x4   :  { %2159 = vmatprep.subr.mxu0 %v2737_v1  ;;  %2474 = vmatprep.subr.bf16.mxu1 %v2739_v5  ;;  %v2834_v10 = vpack.c.bf16 %v46_v7, %v45_v6  ;;  %v48_v11 = vld [vmem:[%s3302_s3 + $0x18] sm:$0xff]  ;;  %v49_v13 = vld [vmem:[%s3302_s3 + $0x20] sm:$0xff]  ;;  %v51_v16 = vld [vmem:[%s3302_s3 + $0x30] sm:$0xff]  ;;  %vm1689_vm9 = vcmask 261120  }
   0x5   :  { %v2840_v12 = vpack.c.bf16 %v48_v11, %v47_v8  ;;  %v2850_v15 = vpack.c.bf16 %v50_v14, %v49_v13  ;;  %v52_v17 = vld [vmem:[%s3302_s3 + $0x38] sm:$0xff]  ;;  %v53_v19 = vld [vmem:[%s3302_s3 + $0x40] sm:$0xff]  ;;  %v54_v20 = vld [vmem:[%s3302_s3 + $0x48] sm:$0xff] }
   0x6   :  { %261 = vxpose.xlu0.b32.start.end [1/1] (short) (narrow) %v1897_v3, 8  ;;  %2476 = vmatpush3.bf16.msra.mxu1 %v2834_v10  ;;  %v2860_v18 = vpack.c.bf16 %v52_v17, %v51_v16  ;;  %v2870_v21 = vpack.c.bf16 %v54_v20, %v53_v19  ;;  %v55_v22 = vld [vmem:[%s3302_s3 + $0x50] sm:$0xff]  ;;  %v56_v23 = vld [vmem:[%s3302_s3 + $0x58] sm:$0xff]  ;;  %v57_v25 = vld [vmem:[%s3302_s3 + $0x60] sm:$0xff] }
   0x7   :  { %631 = vxpose.xlu1.b32.start.end [1/1] (short) (narrow) %v1901_v9, 8  ;;  %2477 = vmatprep.subr.bf16.mxu1 %v2739_v5  ;;  %v2880_v24 = vpack.c.bf16 %v56_v23, %v55_v22  ;;  %v58_v26 = vld [vmem:[%s3302_s3 + $0x68] sm:$0xff]  ;;  %v59_v30 = vld [vmem:[%s3302_s3 + $0x70] sm:$0xff]  ;;  %v60_v31 = vld [vmem:[%s3302_s3 + $0x78] sm:$0xff] }
   0x8   :  { %v2890_v27 = vpack.c.bf16 %v58_v26, %v57_v25  ;;  %v2923_v32 = vpack.c.bf16 %v60_v31, %v59_v30  ;;  %v1903_v33 = vld [vmem:[%s3300_s0 + $0x20] sm:$0xff]  ;;  %v1905_v34 = vld [vmem:[%s3300_s0 + $0x28] sm:$0xff]  ;;  %v1907_v46 = vld [vmem:[%s3300_s0 + $0x30] sm:$0xff] }
   0x9   :  { %v2938_v35 = vld [vmem:[%s3303_s2] ss:$0 sm:$0xff]  ;;  %v1909_v47 = vld [vmem:[%s3300_s0 + $0x38] sm:$0xff] }
   0xa   :  { %2479 = vmatpush3.bf16.msra.mxu1 %v2840_v12  ;;  %816 = vxpose.xlu0.b32.start.end [1/1] (short) (narrow) %v1903_v33, 8  ;;  %v2997_v48 = vld [vmem:[%s3304_s4] ss:$0 sm:$0xff] }
   0xb   :  { %2480 = vmatprep.subr.bf16.mxu1 %v2739_v5  ;;  %1001 = vxpose.xlu1.b32.start.end [1/1] (short) (narrow) %v1905_v34, 8 }
   0xe   :  { %2482 = vmatpush3.bf16.msra.mxu1 %v2850_v15  ;;  %1186 = vxpose.xlu0.b32.start.end [1/1] (short) (narrow) %v1907_v46, 8 }
   0xf   :  { %2483 = vmatprep.subr.bf16.mxu1 %v2739_v5  ;;  %1371 = vxpose.xlu1.b32.start.end [1/1] (short) (narrow) %v1909_v47, 8 }
  0x12   :  { %2485 = vmatpush3.bf16.msra.mxu1 %v2860_v18 }
  0x13   :  { %2486 = vmatprep.subr.bf16.mxu1 %v2739_v5 }
  0x16   :  { %2488 = vmatpush3.bf16.msra.mxu1 %v2870_v21 }
  0x17   :  { %2489 = vmatprep.subr.bf16.mxu1 %v2739_v5 }
  0x1a   :  { %2491 = vmatpush3.bf16.msra.mxu1 %v2880_v24 }
  0x1b   :  { %2492 = vmatprep.subr.bf16.mxu1 %v2739_v5 }
  0x1e   :  { %2494 = vmatpush3.bf16.msra.mxu1 %v2890_v27 }
  0x1f   :  { %2495 = vmatprep.subr.bf16.mxu1 %v2739_v5 }
  0x22   :  { %2497 = vmatpush3.bf16.msra.mxu1 %v2923_v32 }
  0x23   :  { %2199 = vmatprep.subr.mxu1 %v2737_v1 }
  0x82   :  { %v85_v28 = vpop.trf.xlu0 }
  0x83   :  { %2122 = vmatmul.mubr.msk.f32.vlgmr.msra.gmra.mrb[0].mxu0 %vm101_vm1, %v85_v28  ;;  %v462_v41 = vpop.trf.xlu1 }
  0x84   :  { %2160 = vmatpush3.msra.mxu0 %v2807_v2  ;;  %2161 = vmatprep.mubr.msk.f32.mxu0 %vm2738_vm0, %v2737_v1 }
  0x85   :  { %2498 = vmatprep.subr.bf16.mxu0 %v2739_v5 }
  0x86   :  { %v277_v29 = vpop.trf.xlu0 }
  0x87   :  { %2162 = vmatmul.mubr.msk.f32.vlgmr.msra.gmra.mrb[2].mxu0 %vm101_vm1, %v277_v29  ;;  %v647_v45 = vpop.trf.xlu1 }
  0x88   :  { %2500 = vmatpush3.bf16.msra.mxu0 %v2834_v10  ;;  %2196 = vmatprep.mubr.msk.f32.mxu0 %vm2738_vm0, %v2737_v1 }
  0x89   :  { %2501 = vmatprep.subr.bf16.mxu0 %v2739_v5 }
  0x8a   :  { %v832_v7 = vpop.trf.xlu0 }
  0x8b   :  { %v1017_v14 = vpop.trf.xlu1 }
  0x8c   :  { %2503 = vmatpush3.bf16.msra.mxu0 %v2840_v12 }
  0x8d   :  { %2504 = vmatprep.subr.bf16.mxu0 %v2739_v5 }
  0x8e   :  { %v1202_v47 = vpop.trf.xlu0 }
  0x90   :  { %2506 = vmatpush3.bf16.msra.mxu0 %v2850_v15 }
  0x91   :  { %2507 = vmatprep.subr.bf16.mxu0 %v2739_v5 }
  0x94   :  { %2509 = vmatpush3.bf16.msra.mxu0 %v2860_v18 }
  0x95   :  { %2510 = vmatprep.subr.bf16.mxu0 %v2739_v5 }
  0x98   :  { %2512 = vmatpush3.bf16.msra.mxu0 %v2870_v21 }
  0x99   :  { %2513 = vmatprep.subr.bf16.mxu0 %v2739_v5 }
  0x9c   :  { %2515 = vmatpush3.bf16.msra.mxu0 %v2880_v24 }
  0x9d   :  { %2516 = vmatprep.subr.bf16.mxu0 %v2739_v5 }
  0xa0   :  { %2518 = vmatpush3.bf16.msra.mxu0 %v2890_v27 }
  0xa1   :  { %2519 = vmatprep.subr.bf16.mxu0 %v2739_v5 }
  0xa4   :  { %2521 = vmatpush3.bf16.msra.mxu0 %v2923_v32 }
  0xa5   :  { %2239 = vmatprep.subr.mxu0 %v2737_v1 }
 0x156   :  { %v171_v36 = vpop.f32.mrb[0].mxu0 }
 0x157   :  { %v172_v37 = vadd.f32 %v2938_v35, %v171_v36  ;;  %v2123_v38 = vpop.f32.mrb[1].mxu0 }
 0x159   :  { %v175_v39 = vmax.f32 %v172_v37, 0.0 }
 0x15a   :  { %v362_v40 = vpop.f32.mrb[2].mxu0 }
 0x15b   :  { %v363_v42 = vadd.f32 %v2938_v35, %v362_v40  ;;  %2157 = vmatmul.mubr.f32.vlgmr.msra.gmra.mrb[0].mxu1 %v175_v39  ;;  %v2163_v43 = vpop.f32.mrb[3].mxu0 }
 0x15c   :  { %2200 = vmatpush3.msra.mxu1 %v2807_v2  ;;  %2201 = vmatprep.mubr.msk.f32.mxu1 %vm2738_vm0, %v2737_v1 }
 0x15d   :  { %v366_v44 = vmax.f32 %v363_v42, 0.0  ;;  %2522 = vmatprep.subr.bf16.mxu1 %v2739_v5 }
 0x15f   :  { %2197 = vmatmul.mubr.f32.vlgmr.msra.gmra.mrb[4].mxu0 %v366_v44  ;;  %2202 = vmatmul.mubr.msk.f32.vlgmr.msra.gmra.mrb[2].mxu1 %vm101_vm1, %v462_v41 }
 0x160   :  { %2240 = vmatpush3.msra.mxu0 %v2807_v2  ;;  %2241 = vmatprep.mubr.msk.f32.mxu0 %vm2738_vm0, %v2737_v1 }
 0x161   :  { %2524 = vmatpush3.bf16.msra.mxu1 %v2834_v10  ;;  %2546 = vmatprep.subr.bf16.mxu0 %v2739_v5 }
 0x162   :  { %2525 = vmatprep.subr.bf16.mxu1 %v2739_v5  ;;  %2236 = vmatprep.mubr.msk.f32.mxu1 %vm2738_vm0, %v2737_v1 }
 0x163   :  { %2242 = vmatmul.mubr.msk.f32.vlgmr.msra.gmra.mrb[6].mxu0 %vm101_vm1, %v647_v45 }
 0x164   :  { %2548 = vmatpush3.bf16.msra.mxu0 %v2834_v10  ;;  %2276 = vmatprep.mubr.msk.f32.mxu0 %vm2738_vm0, %v2737_v1 }
 0x165   :  { %2527 = vmatpush3.bf16.msra.mxu1 %v2840_v12  ;;  %2549 = vmatprep.subr.bf16.mxu0 %v2739_v5 }
 0x166   :  { %2528 = vmatprep.subr.bf16.mxu1 %v2739_v5 }
 0x168   :  { %2551 = vmatpush3.bf16.msra.mxu0 %v2840_v12 }
 0x169   :  { %2530 = vmatpush3.bf16.msra.mxu1 %v2850_v15  ;;  %2552 = vmatprep.subr.bf16.mxu0 %v2739_v5 }
 0x16a   :  { %2531 = vmatprep.subr.bf16.mxu1 %v2739_v5 }
 0x16c   :  { %2554 = vmatpush3.bf16.msra.mxu0 %v2850_v15 }
 0x16d   :  { %2533 = vmatpush3.bf16.msra.mxu1 %v2860_v18  ;;  %2555 = vmatprep.subr.bf16.mxu0 %v2739_v5 }
 0x16e   :  { %2534 = vmatprep.subr.bf16.mxu1 %v2739_v5 }
 0x170   :  { %2557 = vmatpush3.bf16.msra.mxu0 %v2860_v18 }
 0x171   :  { %2536 = vmatpush3.bf16.msra.mxu1 %v2870_v21  ;;  %2558 = vmatprep.subr.bf16.mxu0 %v2739_v5 }
 0x172   :  { %2537 = vmatprep.subr.bf16.mxu1 %v2739_v5 }
 0x174   :  { %2560 = vmatpush3.bf16.msra.mxu0 %v2870_v21 }
 0x175   :  { %2539 = vmatpush3.bf16.msra.mxu1 %v2880_v24  ;;  %2561 = vmatprep.subr.bf16.mxu0 %v2739_v5 }
 0x176   :  { %2540 = vmatprep.subr.bf16.mxu1 %v2739_v5 }
 0x178   :  { %2563 = vmatpush3.bf16.msra.mxu0 %v2880_v24 }
 0x179   :  { %2542 = vmatpush3.bf16.msra.mxu1 %v2890_v27  ;;  %2564 = vmatprep.subr.bf16.mxu0 %v2739_v5 }
 0x17a   :  { %2543 = vmatprep.subr.bf16.mxu1 %v2739_v5 }
 0x17c   :  { %2566 = vmatpush3.bf16.msra.mxu0 %v2890_v27 }
 0x17d   :  { %2545 = vmatpush3.bf16.msra.mxu1 %v2923_v32  ;;  %2567 = vmatprep.subr.bf16.mxu0 %v2739_v5 }
 0x17e   :  { %2279 = vmatprep.subr.mxu1 %v2737_v1 }
 0x180   :  { %2569 = vmatpush3.bf16.msra.mxu0 %v2923_v32 }
 0x181   :  { %2319 = vmatprep.subr.mxu0 %v2737_v1 }
 0x22e   :  { %v248_v49 = vpop.f32.mrb[0].mxu1 }
 0x22f   :  { %v249_v50 = vadd.f32 %v2997_v48, %v248_v49  ;;  %v2158_v51 = vpop.f32.mrb[1].mxu1 }
 0x231   :  { %v252_v52 = vmax.f32 %v249_v50, 0.0 }
 0x232   :  { %v433_v53 = vpop.f32.mrb[4].mxu0  ;;  %v547_v54 = vpop.f32.mrb[2].mxu1 }
 0x233   :  { %v253_v55 = vrot.slane %v252_v52, 4  ;;  %v434_v56 = vadd.f32 %v2997_v48, %v433_v53  ;;  %v548_v57 = vadd.f32 %v2938_v35, %v547_v54  ;;  %v2198_v58 = vpop.f32.mrb[5].mxu0  ;;  %v2203_v59 = vpop.f32.mrb[3].mxu1 }
 0x234   :  { %v1387_v54 = vpop.trf.xlu1 }
 0x235   :  { %v254_v60 = vadd.f32 %v253_v55, %v252_v52  ;;  %v437_v61 = vmax.f32 %v434_v56, 0.0  ;;  %v551_v62 = vmax.f32 %v548_v57, 0.0 }
 0x236   :  { %v732_v63 = vpop.f32.mrb[6].mxu0 }
 0x237   :  { %v255_v0 = vrot.slane %v254_v60, 2  ;;  %v438_v3 = vrot.slane %v437_v61, 4  ;;  %v733_v4 = vadd.f32 %v2938_v35, %v732_v63  ;;  %2237 = vmatmul.mubr.f32.vlgmr.msra.gmra.mrb[4].mxu1 %v551_v62  ;;  %v2243_v6 = vpop.f32.mrb[7].mxu0 }
 0x238   :  { %2280 = vmatpush3.msra.mxu1 %v2807_v2  ;;  %2281 = vmatprep.mubr.msk.f32.mxu1 %vm2738_vm0, %v2737_v1 }
 0x239   :  { %v256_v8 = vadd.f32 %v255_v0, %v254_v60  ;;  %v439_v9 = vadd.f32 %v438_v3, %v437_v61  ;;  %v736_v11 = vmax.f32 %v733_v4, 0.0  ;;  %2570 = vmatprep.subr.bf16.mxu1 %v2739_v5 }
 0x23b   :  { %v440_v13 = vrot.slane %v439_v9, 2  ;;  %2277 = vmatmul.mubr.f32.vlgmr.msra.gmra.mrb[8].mxu0 %v736_v11  ;;  %2282 = vmatmul.mubr.msk.f32.vlgmr.msra.gmra.mrb[6].mxu1 %vm101_vm1, %v832_v7  ;;  %v257_v16 = vrot.slane %v256_v8, 1 }
 0x23c   :  { %2320 = vmatpush3.msra.mxu0 %v2807_v2  ;;  %2321 = vmatprep.mubr.msk.f32.mxu0 %vm2738_vm0, %v2737_v1 }
 0x23d   :  { %v441_v17 = vadd.f32 %v440_v13, %v439_v9  ;;  %2572 = vmatpush3.bf16.msra.mxu1 %v2834_v10  ;;  %2594 = vmatprep.subr.bf16.mxu0 %v2739_v5  ;;  %v258_v20 = vadd.f32 %v257_v16, %v256_v8  ;;  %v1578_v8 = vld [vmem:[%s3305_s5 + $0x10] sm:$0xff]  ;;  %v1579_v9 = vld [vmem:[%s3305_s5 + $0x18] sm:$0xff] }
 0x23e   :  { %2573 = vmatprep.subr.bf16.mxu1 %v2739_v5  ;;  %2316 = vmatprep.mubr.msk.f32.mxu1 %vm2738_vm0, %v2737_v1 }
 0x23f   :  { %v442_v19 = vrot.slane %v441_v17, 1  ;;  %2322 = vmatmul.mubr.msk.f32.vlgmr.msra.gmra.mrb[10].mxu0 %vm101_vm1, %v1017_v14 }
 0x240   :  { %2596 = vmatpush3.bf16.msra.mxu0 %v2834_v10  ;;  %2356 = vmatprep.mubr.msk.f32.mxu0 %vm2738_vm0, %v2737_v1 }
 0x241   :  { %v443_v22 = vadd.f32 %v442_v19, %v441_v17  ;;  %2575 = vmatpush3.bf16.msra.mxu1 %v2840_v12  ;;  %2597 = vmatprep.subr.bf16.mxu0 %v2739_v5  ;;  %v2670_v19 = vpack.c.bf16 %v1579_v9, %v1578_v8  ;;  %v1674_v8 = vld [vmem:[%s3306_s7 + $0x28] sm:$0xff]  ;;  %v1676_v9 = vld [vmem:[%s3306_s7 + $0x38] sm:$0xff] }
 0x242   :  { %2576 = vmatprep.subr.bf16.mxu1 %v2739_v5 }
 0x243   :  { %v3023_v23 = vsel %vm1555_vm2, %v258_v20, %v443_v22 }
 0x244   :  { %2599 = vmatpush3.bf16.msra.mxu0 %v2840_v12 }
 0x245   :  { %2578 = vmatpush3.bf16.msra.mxu1 %v2850_v15  ;;  %2600 = vmatprep.subr.bf16.mxu0 %v2739_v5 }
 0x246   :  { %2579 = vmatprep.subr.bf16.mxu1 %v2739_v5 }
 0x248   :  { %2602 = vmatpush3.bf16.msra.mxu0 %v2850_v15 }
 0x249   :  { %2581 = vmatpush3.bf16.msra.mxu1 %v2860_v18  ;;  %2603 = vmatprep.subr.bf16.mxu0 %v2739_v5 }
 0x24a   :  { %2582 = vmatprep.subr.bf16.mxu1 %v2739_v5 }
 0x24c   :  { %2605 = vmatpush3.bf16.msra.mxu0 %v2860_v18 }
 0x24d   :  { %2584 = vmatpush3.bf16.msra.mxu1 %v2870_v21  ;;  %2606 = vmatprep.subr.bf16.mxu0 %v2739_v5 }
 0x24e   :  { %2585 = vmatprep.subr.bf16.mxu1 %v2739_v5 }
 0x250   :  { %2608 = vmatpush3.bf16.msra.mxu0 %v2870_v21 }
 0x251   :  { %2587 = vmatpush3.bf16.msra.mxu1 %v2880_v24  ;;  %2609 = vmatprep.subr.bf16.mxu0 %v2739_v5 }
 0x252   :  { %2588 = vmatprep.subr.bf16.mxu1 %v2739_v5 }
 0x254   :  { %2611 = vmatpush3.bf16.msra.mxu0 %v2880_v24 }
 0x255   :  { %2590 = vmatpush3.bf16.msra.mxu1 %v2890_v27  ;;  %2612 = vmatprep.subr.bf16.mxu0 %v2739_v5 }
 0x256   :  { %2591 = vmatprep.subr.bf16.mxu1 %v2739_v5 }
 0x258   :  { %2614 = vmatpush3.bf16.msra.mxu0 %v2890_v27 }
 0x259   :  { %2593 = vmatpush3.bf16.msra.mxu1 %v2923_v32  ;;  %2615 = vmatprep.subr.bf16.mxu0 %v2739_v5 }
 0x25a   :  { %2359 = vmatprep.subr.mxu1 %v2737_v1 }
 0x25c   :  { %2617 = vmatpush3.bf16.msra.mxu0 %v2923_v32 }
 0x25d   :  { %2399 = vmatprep.subr.mxu0 %v2737_v1 }
 0x30a   :  { %v618_v25 = vpop.f32.mrb[4].mxu1 }
 0x30b   :  { %v619_v26 = vadd.f32 %v2997_v48, %v618_v25  ;;  %v2238_v28 = vpop.f32.mrb[5].mxu1 }
 0x30d   :  { %v622_v29 = vmax.f32 %v619_v26, 0.0 }
 0x30e   :  { %v803_v30 = vpop.f32.mrb[8].mxu0  ;;  %v917_v31 = vpop.f32.mrb[6].mxu1 }
 0x30f   :  { %v623_v33 = vrot.slane %v622_v29, 4  ;;  %v804_v34 = vadd.f32 %v2997_v48, %v803_v30  ;;  %v918_v36 = vadd.f32 %v2938_v35, %v917_v31  ;;  %v2278_v37 = vpop.f32.mrb[9].mxu0  ;;  %v2283_v38 = vpop.f32.mrb[7].mxu1 }
 0x310   :  { %v1582_v38 = vld [vmem:[%s3305_s5 + $0x30] sm:$0xff] }
 0x311   :  { %v624_v39 = vadd.f32 %v623_v33, %v622_v29  ;;  %v807_v40 = vmax.f32 %v804_v34, 0.0  ;;  %v921_v41 = vmax.f32 %v918_v36, 0.0  ;;  %v1580_v34 = vld [vmem:[%s3305_s5 + $0x20] sm:$0xff]  ;;  %v1581_v36 = vld [vmem:[%s3305_s5 + $0x28] sm:$0xff] }
 0x312   :  { %v1102_v42 = vpop.f32.mrb[10].mxu0  ;;  %v2673_v37 = vpack.c.bf16 %v1581_v36, %v1580_v34  ;;  %v1786_v34 = vld [vmem:[%s3307_s9 + $0xa0] sm:$0xff]  ;;  %v1787_v36 = vld [vmem:[%s3307_s9 + $0xa8] sm:$0xff] }
 0x313   :  { %v625_v43 = vrot.slane %v624_v39, 2  ;;  %v808_v44 = vrot.slane %v807_v40, 4  ;;  %v1103_v45 = vadd.f32 %v2938_v35, %v1102_v42  ;;  %2317 = vmatmul.mubr.f32.vlgmr.msra.gmra.mrb[8].mxu1 %v921_v41  ;;  %v2323_v46 = vpop.f32.mrb[11].mxu0  ;;  %v1584_v41 = vld [vmem:[%s3305_s5 + $0x40] sm:$0xff]  ;;  %v1585_v42 = vld [vmem:[%s3305_s5 + $0x48] sm:$0xff] }
 0x314   :  { %2360 = vmatpush3.msra.mxu1 %v2807_v2  ;;  %2361 = vmatprep.mubr.msk.f32.mxu1 %vm2738_vm0, %v2737_v1 }
 0x315   :  { %v626_v49 = vadd.f32 %v625_v43, %v624_v39  ;;  %v809_v50 = vadd.f32 %v808_v44, %v807_v40  ;;  %v1106_v51 = vmax.f32 %v1103_v45, 0.0  ;;  %2618 = vmatprep.subr.bf16.mxu1 %v2739_v5  ;;  %v1583_v39 = vld [vmem:[%s3305_s5 + $0x38] sm:$0xff]  ;;  %v2679_v43 = vpack.c.bf16 %v1585_v42, %v1584_v41  ;;  %v1586_v44 = vld [vmem:[%s3305_s5 + $0x50] sm:$0xff] }
 0x316   :  { %v2676_v40 = vpack.c.bf16 %v1583_v39, %v1582_v38  ;;  %v1587_v45 = vld [vmem:[%s3305_s5 + $0x58] sm:$0xff]  ;;  %v2706_v38 = vpack.c.bf16 %v1787_v36, %v1786_v34  ;;  %v1770_v39 = vld [vmem:[%s3307_s9 + $0x20] sm:$0xff]  ;;  %v1788_v41 = vld [vmem:[%s3307_s9 + $0xb0] sm:$0xff] }
 0x317   :  { %v627_v52 = vrot.slane %v626_v49, 1  ;;  %v810_v53 = vrot.slane %v809_v50, 2  ;;  %2357 = vmatmul.mubr.f32.vlgmr.msra.gmra.mrb[12].mxu0 %v1106_v51  ;;  %2362 = vmatmul.mubr.msk.f32.vlgmr.msra.gmra.mrb[10].mxu1 %vm101_vm1, %v1202_v47  ;;  %v2682_v46 = vpack.c.bf16 %v1587_v45, %v1586_v44  ;;  %v1588_v47 = vld [vmem:[%s3305_s5 + $0x60] sm:$0xff]  ;;  %v1590_v51 = vld [vmem:[%s3305_s5 + $0x70] sm:$0xff]  ;;  %v1789_v42 = vld [vmem:[%s3307_s9 + $0xb8] sm:$0xff] }
 0x318   :  { %2400 = vmatpush3.msra.mxu0 %v2807_v2  ;;  %2401 = vmatprep.mubr.msk.f32.mxu0 %vm2738_vm0, %v2737_v1  ;;  %v2710_v44 = vpack.c.bf16 %v1789_v42, %v1788_v41  ;;  %v1772_v45 = vld [vmem:[%s3307_s9 + $0x30] sm:$0xff] }
 0x319   :  { %v628_v55 = vadd.f32 %v627_v52, %v626_v49  ;;  %v811_v56 = vadd.f32 %v810_v53, %v809_v50  ;;  %2620 = vmatpush3.bf16.msra.mxu1 %v2834_v10  ;;  %2642 = vmatprep.subr.bf16.mxu0 %v2739_v5  ;;  %v1589_v49 = vld [vmem:[%s3305_s5 + $0x68] sm:$0xff]  ;;  %v1591_v52 = vld [vmem:[%s3305_s5 + $0x78] sm:$0xff] }
 0x31a   :  { %2621 = vmatprep.subr.bf16.mxu1 %v2739_v5  ;;  %2396 = vmatprep.mubr.msk.f32.mxu1 %vm2738_vm0, %v2737_v1  ;;  %v2685_v50 = vpack.c.bf16 %v1589_v49, %v1588_v47  ;;  %v2688_v53 = vpack.c.bf16 %v1591_v52, %v1590_v51  ;;  %v1790_v47 = vld [vmem:[%s3307_s9 + $0xc0] sm:$0xff]  ;;  %v1791_v49 = vld [vmem:[%s3307_s9 + $0xc8] sm:$0xff] }
 0x31b   :  { %v1558_v57 = vsel %vm1557_vm3, %v3023_v23, %v628_v55  ;;  %v812_v58 = vrot.slane %v811_v56, 1  ;;  %2402 = vmatmul.mubr.msk.f32.vlgmr.msra.gmra.mrb[14].mxu0 %vm101_vm1, %v1387_v54  ;;  %v1670_v54 = vld [vmem:[%s3306_s7 + $0x8] sm:$0xff]  ;;  %v1672_v55 = vld [vmem:[%s3306_s7 + $0x18] sm:$0xff]  ;;  %v2714_v51 = vpack.c.bf16 %v1791_v49, %v1790_v47  ;;  %v1774_v52 = vld [vmem:[%s3307_s9 + $0x40] sm:$0xff] }
 0x31c   :  { %2644 = vmatpush3.bf16.msra.mxu0 %v2834_v10  ;;  %2436 = vmatprep.mubr.msk.f32.mxu0 %vm2738_vm0, %v2737_v1 }
 0x31d   :  { %v813_v2 = vadd.f32 %v812_v58, %v811_v56  ;;  %2623 = vmatpush3.bf16.msra.mxu1 %v2840_v12  ;;  %2645 = vmatprep.subr.bf16.mxu0 %v2739_v5  ;;  %v2690_v56 = vpack.c.bf16 %v1672_v55, %v1670_v54  ;;  %v1792_v54 = vld [vmem:[%s3307_s9 + $0xd0] sm:$0xff]  ;;  %v1793_v55 = vld [vmem:[%s3307_s9 + $0xd8] sm:$0xff] }
 0x31e   :  { %2624 = vmatprep.subr.bf16.mxu1 %v2739_v5 }
 0x31f   :  { %v3076_v59 = vsel %vm1559_vm4, %v1558_v57, %v813_v2 }
 0x320   :  { %2647 = vmatpush3.bf16.msra.mxu0 %v2840_v12 }
 0x321   :  { %2626 = vmatpush3.bf16.msra.mxu1 %v2850_v15  ;;  %2648 = vmatprep.subr.bf16.mxu0 %v2739_v5 }
 0x322   :  { %2627 = vmatprep.subr.bf16.mxu1 %v2739_v5 }
 0x324   :  { %2650 = vmatpush3.bf16.msra.mxu0 %v2850_v15 }
 0x325   :  { %2629 = vmatpush3.bf16.msra.mxu1 %v2860_v18  ;;  %2651 = vmatprep.subr.bf16.mxu0 %v2739_v5 }
 0x326   :  { %2630 = vmatprep.subr.bf16.mxu1 %v2739_v5 }
 0x328   :  { %2653 = vmatpush3.bf16.msra.mxu0 %v2860_v18 }
 0x329   :  { %2632 = vmatpush3.bf16.msra.mxu1 %v2870_v21  ;;  %2654 = vmatprep.subr.bf16.mxu0 %v2739_v5 }
 0x32a   :  { %2633 = vmatprep.subr.bf16.mxu1 %v2739_v5 }
 0x32c   :  { %2656 = vmatpush3.bf16.msra.mxu0 %v2870_v21  ;;  %v1576_v21 = vld [vmem:[%s3305_s5] sm:$0xff] }
 0x32d   :  { %2635 = vmatpush3.bf16.msra.mxu1 %v2880_v24  ;;  %2657 = vmatprep.subr.bf16.mxu0 %v2739_v5 }
 0x32e   :  { %2636 = vmatprep.subr.bf16.mxu1 %v2739_v5 }
 0x330   :  { %2659 = vmatpush3.bf16.msra.mxu0 %v2880_v24  ;;  %v1577_v24 = vld [vmem:[%s3305_s5 + $0x8] sm:$0xff] }
 0x331   :  { %2638 = vmatpush3.bf16.msra.mxu1 %v2890_v27  ;;  %2660 = vmatprep.subr.bf16.mxu0 %v2739_v5  ;;  %v2667_v3 = vpack.c.bf16 %v1577_v24, %v1576_v21 }
 0x332   :  { %2639 = vmatprep.subr.bf16.mxu1 %v2739_v5 }
 0x334   :  { %2662 = vmatpush3.bf16.msra.mxu0 %v2890_v27 }
 0x335   :  { %2641 = vmatpush3.bf16.msra.mxu1 %v2923_v32  ;;  %2663 = vmatprep.subr.bf16.mxu0 %v2739_v5 }
 0x336   :  { %2666 = vmatprep.subr.bf16.mxu1 %v2739_v5 }
 0x338   :  { %2665 = vmatpush3.bf16.msra.mxu0 %v2923_v32 }
 0x3e6   :  { %v988_v10 = vpop.f32.mrb[8].mxu1 }
 0x3e7   :  { %v989_v12 = vadd.f32 %v2997_v48, %v988_v10  ;;  %v2318_v15 = vpop.f32.mrb[9].mxu1 }
 0x3e9   :  { %v992_v18 = vmax.f32 %v989_v12, 0.0 }
 0x3ea   :  { %v1173_v27 = vpop.f32.mrb[12].mxu0  ;;  %v1287_v60 = vpop.f32.mrb[10].mxu1 }
 0x3eb   :  { %v993_v61 = vrot.slane %v992_v18, 4  ;;  %v1174_v62 = vadd.f32 %v2997_v48, %v1173_v27  ;;  %v1288_v32 = vadd.f32 %v2938_v35, %v1287_v60  ;;  %v2358_v63 = vpop.f32.mrb[13].mxu0  ;;  %v2363_v0 = vpop.f32.mrb[11].mxu1 }
 0x3ed   :  { %v994_v4 = vadd.f32 %v993_v61, %v992_v18  ;;  %v1177_v6 = vmax.f32 %v1174_v62, 0.0  ;;  %v1291_v7 = vmax.f32 %v1288_v32, 0.0 }
 0x3ee   :  { %v1472_v11 = vpop.f32.mrb[14].mxu0 }
 0x3ef   :  { %v995_v13 = vrot.slane %v994_v4, 2  ;;  %v1178_v14 = vrot.slane %v1177_v6, 4  ;;  %v1473_v16 = vadd.f32 %v2938_v35, %v1472_v11  ;;  %2397 = vmatmul.mubr.f32.vlgmr.msra.gmra.mrb[12].mxu1 %v1291_v7  ;;  %v2403_v17 = vpop.f32.mrb[15].mxu0 }
 0x3f0   :  { %2668 = vmatpush3.bf16.msra.mxu1 %v2667_v3  ;;  %2471 = vmatprep.mubr.msk.f32.mxu1 %vm2738_vm0, %v2737_v1  ;;  %v1673_v17 = vld [vmem:[%s3306_s7 + $0x20] sm:$0xff] }
 0x3f1   :  { %v996_v20 = vadd.f32 %v995_v13, %v994_v4  ;;  %v1179_v22 = vadd.f32 %v1178_v14, %v1177_v6  ;;  %v1476_v23 = vmax.f32 %v1473_v16, 0.0  ;;  %2669 = vmatprep.subr.bf16.mxu1 %v2739_v5  ;;  %v1669_v6 = vld [vmem:[%s3306_s7] sm:$0xff]  ;;  %v2694_v16 = vpack.c.bf16 %v1676_v9, %v1674_v8 }
 0x3f2   :  { %v1677_v8 = vld [vmem:[%s3309_s8] sm:$0x3] }
 0x3f3   :  { %v997_v25 = vrot.slane %v996_v20, 1  ;;  %v1180_v26 = vrot.slane %v1179_v22, 2  ;;  %2437 = vmatmul.mubr.f32.vlgmr.msra.gmra.mrb[16].mxu0 %v1476_v23  ;;  %v1783_v23 = vld [vmem:[%s3307_s9 + $0x88] sm:$0xff] }
 0x3f4   :  { %2671 = vmatpush3.bf16.msra.mxu1 %v2670_v19  ;;  %v1675_v19 = vld [vmem:[%s3306_s7 + $0x30] sm:$0xff] }
 0x3f5   :  { %v998_v28 = vadd.f32 %v997_v25, %v996_v20  ;;  %v1181_v29 = vadd.f32 %v1180_v26, %v1179_v22  ;;  %2672 = vmatprep.subr.bf16.mxu1 %v2739_v5  ;;  %v2696_v20 = vpack.c.bf16 %v1675_v19, %v1673_v17  ;;  %v1782_v22 = vld [vmem:[%s3307_s9 + $0x80] sm:$0xff]  ;;  %v1767_v26 = vld [vmem:[%s3307_s9 + $0x8] sm:$0xff] }
 0x3f6   :  { %v2698_v25 = vpack.c.bf16 %v1783_v23, %v1782_v22 }
 0x3f7   :  { %v1562_v35 = vsel %vm1561_vm5, %v3076_v59, %v998_v28  ;;  %v1182_v30 = vrot.slane %v1181_v29, 1  ;;  %v1784_v28 = vld [vmem:[%s3307_s9 + $0x90] sm:$0xff] }
 0x3f8   :  { %2674 = vmatpush3.bf16.msra.mxu1 %v2673_v37  ;;  %2699 = vmatprep.subr.bf16.mxu0 %v2698_v25 }
 0x3f9   :  { %v1183_v31 = vadd.f32 %v1182_v30, %v1181_v29  ;;  %2675 = vmatprep.subr.bf16.mxu1 %v2739_v5  ;;  %v1785_v29 = vld [vmem:[%s3307_s9 + $0x98] sm:$0xff] }
 0x3fa   :  { %v2702_v30 = vpack.c.bf16 %v1785_v29, %v1784_v28 }
 0x3fb   :  { %v1564_v33 = vsel %vm1563_vm6, %v1562_v35, %v1183_v31  ;;  %v1768_v31 = vld [vmem:[%s3307_s9 + $0x10] sm:$0xff] }
 0x3fc   :  { %2677 = vmatpush3.bf16.msra.mxu1 %v2676_v40  ;;  %v1771_v40 = vld [vmem:[%s3307_s9 + $0x28] sm:$0xff] }
 0x3fd   :  { %2678 = vmatprep.subr.bf16.mxu1 %v2739_v5 }
 0x400   :  { %2680 = vmatpush3.bf16.msra.mxu1 %v2679_v43  ;;  %v2708_v43 = vpack.c.bf16 %v1771_v40, %v1770_v39 }
 0x401   :  { %2681 = vmatprep.subr.bf16.mxu1 %v2739_v5 }
 0x404   :  { %2683 = vmatpush3.bf16.msra.mxu1 %v2682_v46  ;;  %v1773_v46 = vld [vmem:[%s3307_s9 + $0x38] sm:$0xff] }
 0x405   :  { %2684 = vmatprep.subr.bf16.mxu1 %v2739_v5 }
 0x408   :  { %2686 = vmatpush3.bf16.msra.mxu1 %v2685_v50  ;;  %v2712_v50 = vpack.c.bf16 %v1773_v46, %v1772_v45 }
 0x409   :  { %2687 = vmatprep.subr.bf16.mxu1 %v2739_v5 }
 0x40c   :  { %2689 = vmatpush3.bf16.msra.mxu1 %v2688_v53  ;;  %v1775_v53 = vld [vmem:[%s3307_s9 + $0x48] sm:$0xff] }
 0x40d   :  { %2691 = vmatprep.subr.bf16.mxu1 %v2690_v56  ;;  %v2716_v56 = vpack.c.bf16 %v1775_v53, %v1774_v52 }
 0x4c2   :  { %v1358_v5 = vpop.f32.mrb[12].mxu1 }
 0x4c3   :  { %v1359_v57 = vadd.f32 %v2997_v48, %v1358_v5  ;;  %v2398_v58 = vpop.f32.mrb[13].mxu1  ;;  %v2718_v5 = vpack.c.bf16 %v1793_v55, %v1792_v54 }
 0x4c4   :  { %v1777_v58 = vld [vmem:[%s3307_s9 + $0x58] sm:$0xff] }
 0x4c5   :  { %v1362_v2 = vmax.f32 %v1359_v57, 0.0  ;;  %v1776_v57 = vld [vmem:[%s3307_s9 + $0x50] sm:$0xff] }
 0x4c6   :  { %v1543_v59 = vpop.f32.mrb[16].mxu0 }
 0x4c7   :  { %v1363_v10 = vrot.slane %v1362_v2, 4  ;;  %v1544_v12 = vadd.f32 %v2997_v48, %v1543_v59  ;;  %v2438_v15 = vpop.f32.mrb[17].mxu0  ;;  %v1671_v48 = vld [vmem:[%s3306_s7 + $0x10] sm:$0xff]  ;;  %v1795_v59 = vld [vmem:[%s3307_s9 + $0xe8] sm:$0xff] }
 0x4c8   :  { %v2692_v13 = vpack.c.bf16 %v1671_v48, %v1669_v6  ;;  %v1911_v15 = vld [vmem:[%s3308_s6] ss:$0 sm:$0xff]  ;;  %v1679_v6 = vlaneseq }
 0x4c9   :  { %v1364_v18 = vadd.f32 %v1363_v10, %v1362_v2  ;;  %v1547_v21 = vmax.f32 %v1544_v12, 0.0  ;;  %v1794_v2 = vld [vmem:[%s3307_s9 + $0xe0] sm:$0xff]  ;;  %v2720_v10 = vpack.c.bf16 %v1777_v58, %v1776_v57 }
 0x4ca   :  { %v2722_v12 = vpack.c.bf16 %v1795_v59, %v1794_v2  ;;  %v1680_v48 = vshrl.u32 %v1679_v6, 7 }
 0x4cb   :  { %v1365_v24 = vrot.slane %v1364_v18, 2  ;;  %v1548_v27 = vrot.slane %v1547_v21, 4 }
 0x4cc   :  { %v1685_v9 = vsub.s32 1, %v1680_v48 }
 0x4cd   :  { %v1366_v60 = vadd.f32 %v1365_v24, %v1364_v18  ;;  %v1549_v61 = vadd.f32 %v1548_v27, %v1547_v21  ;;  %v1778_v27 = vld [vmem:[%s3307_s9 + $0x60] sm:$0xff] }
 0x4cf   :  { %v1367_v62 = vrot.slane %v1366_v60, 1  ;;  %v1550_v32 = vrot.slane %v1549_v61, 2 }
 0x4d1   :  { %v1368_v63 = vadd.f32 %v1367_v62, %v1366_v60  ;;  %v1551_v0 = vadd.f32 %v1550_v32, %v1549_v61  ;;  %v1779_v60 = vld [vmem:[%s3307_s9 + $0x68] sm:$0xff]  ;;  %v1796_v62 = vld [vmem:[%s3307_s9 + $0xf0] sm:$0xff]  ;;  %v1797_v32 = vld [vmem:[%s3307_s9 + $0xf8] sm:$0xff] }
 0x4d2   :  { %v2724_v61 = vpack.c.bf16 %v1779_v60, %v1778_v27 }
 0x4d3   :  { %v1552_v3 = vrot.slane %v1551_v0, 1  ;;  %v1566_v4 = vsel %vm1565_vm7, %v1564_v33, %v1368_v63  ;;  %v1769_v33 = vld [vmem:[%s3307_s9 + $0x18] sm:$0xff]  ;;  %v2726_v63 = vpack.c.bf16 %v1797_v32, %v1796_v62 }
 0x4d4   :  { %v2704_v37 = vpack.c.bf16 %v1769_v33, %v1768_v31  ;;  %v1876_v31 = vand.u32 127, %v1679_v6 }
 0x4d5   :  { %v1553_v7 = vadd.f32 %v1552_v3, %v1551_v0  ;;  %v1780_v0 = vld [vmem:[%s3307_s9 + $0x70] sm:$0xff]  ;;  %v1781_v3 = vld [vmem:[%s3307_s9 + $0x78] sm:$0xff] }
 0x4d6   :  { %vm1877_vm10 = vcmp.ge.s32.totalorder %v1876_v31, 32  ;;  %vm1878_vm11 = vcmp.lt.s32.totalorder %v1876_v31, 64 }
 0x4d7   :  { %v1568_v11 = vsel %vm1567_vm8, %v1566_v4, %v1553_v7  ;;  %v2728_v4 = vpack.c.bf16 %v1781_v3, %v1780_v0  ;;  %v1681_v7 = vsub.s32 0, %v1680_v48  ;;  %vm1879_vm12 = vmand %vm1877_vm10, %vm1878_vm11 }
 0x4d8   :  { %v1575_v14 = vmul.f32 0.125, %v1568_v11 }
 0x4d9   :  { %v1682_v11 = vrot.slane %v1677_v8, %v1681_v7 }
 0x4da   :  { %2472 = vmatmul.mubr.f32.vlgmr.msra.gmra.mrb[14].mxu1 %v1575_v14 }
 0x4db   :  { %2693 = vmatpush1.bf16.msra.mxu1 %v2692_v13  ;;  %1757 = vmatprep.mubr.f32.mxu1 %v2737_v1  ;;  %v1766_v1 = vld [vmem:[%s3307_s9] sm:$0xff]  ;;  %v1686_v13 = vrot.slane %v1677_v8, %v1685_v9 }
 0x4dc   :  { %2695 = vmatprep.subr.bf16.mxu1 %v2694_v16  ;;  %v2700_v35 = vpack.c.bf16 %v1767_v26, %v1766_v1  ;;  %v1913_v1 = vld [vmem:[%s3310_s10] ss:$0 sm:$0xff] }
 0x4de   :  { %2701 = vmatpush3.bf16.msra.mxu0 %v2700_v35 }
 0x4df   :  { %2697 = vmatpush1.bf16.msra.mxu1 %v2696_v20  ;;  %2703 = vmatprep.subr.bf16.mxu0 %v2702_v30 }
 0x4e2   :  { %2705 = vmatpush3.bf16.msra.mxu0 %v2704_v37 }
 0x4e3   :  { %2707 = vmatprep.subr.bf16.mxu0 %v2706_v38 }
 0x4e6   :  { %2709 = vmatpush3.bf16.msra.mxu0 %v2708_v43 }
 0x4e7   :  { %2711 = vmatprep.subr.bf16.mxu0 %v2710_v44 }
 0x4ea   :  { %2713 = vmatpush3.bf16.msra.mxu0 %v2712_v50 }
 0x4eb   :  { %2715 = vmatprep.subr.bf16.mxu0 %v2714_v51 }
 0x4ee   :  { %2717 = vmatpush3.bf16.msra.mxu0 %v2716_v56 }
 0x4ef   :  { %2719 = vmatprep.subr.bf16.mxu0 %v2718_v5 }
 0x4f2   :  { %2721 = vmatpush3.bf16.msra.mxu0 %v2720_v10 }
 0x4f3   :  { %2723 = vmatprep.subr.bf16.mxu0 %v2722_v12 }
 0x4f6   :  { %2725 = vmatpush3.bf16.msra.mxu0 %v2724_v61 }
 0x4f7   :  { %2727 = vmatprep.subr.bf16.mxu0 %v2726_v63 }
 0x4fa   :  { %2729 = vmatpush3.bf16.msra.mxu0 %v2728_v4 }
 0x5ad   :  { %v1665_v18 = vpop.f32.mrb[14].mxu1 }
 0x5ae   :  { %v1666_v21 = vadd.f32 %v1911_v15, %v1665_v18  ;;  %v2473_v24 = vpop.f32.mrb[15].mxu1 }
 0x5b0   :  { %1912 = vmatmul.mubr.msk.f32.vlgmr.msra.gmra.mrb[16].mxu1 %vm1689_vm9, %v1666_v21 }
 0x683   :  { %v1759_v14 = vpop.f32.mrb[16].mxu1 }
 0x684   :  { %v1760_v16 = vadd.f32 %v1759_v14, %v1682_v11  ;;  %v1761_v17 = vpop.f32.mrb[17].mxu1 }
 0x685   :  { %v1762_v19 = vadd.f32 %v1761_v17, %v1686_v13 }
 0x686   :  { %v1764_v22 = vmax.f32 %v1760_v16, 0.0 }
 0x687   :  { %v1765_v20 = vmax.f32 %v1762_v19, 0.0 }
 0x689   :  { %1869 = vmatprep.mubr.f32.mxu0 %v1765_v20 }
 0x68a   :  { %1870 = vmatmul.mubr.f32.vlgmr.msra.gmra.mrb[18].mxu0 %v1764_v22 }
 0x75d   :  { %v2116_v23 = vpop.f32.mrb[18].mxu0 }
 0x75e   :  { %v2117_v25 = vpop.f32.mrb[19].mxu0 }
 0x75f   :  { %v2118_v26 = vadd.f32 %v2117_v25, %v2116_v23 }
 0x761   :  { %v1872_v28 = vadd.f32 %v2118_v26, %v1913_v1 }
 0x763   :  { %v1914_v29 = vmul.f32 -1.442695, %v1872_v28 }
 0x765   :  { %2733 = vpow2.f32 %v1914_v29 }
 0x76f   :  { %v2734_v35 = vpop.eup %2733 }
 0x770   :  { %v1883_v30 = vadd.f32 1.0, %v2734_v35 }
 0x772   :  { %2735 = vrcp.f32 %v1883_v30 }
 0x77c   :  { %v2736_v33 = vpop.eup %2735 }
 0x77d   :  { %v1886_v34 = vmul.f32 0.9, %v2736_v33 }
 0x77f   :  { %v1887_v36 = vadd.f32 0.1, %v1886_v34 }
 0x781   :  { %v1888_v37 = vsel %vm1879_vm12, %v1887_v36, %v1872_v28 }
 0x782   :  { %1889 = vst [vmem:[%s3311_s11] sm:$0xff] %v1888_v37 }

</bundles_post_ra>
